<compile_context>
chip_gen: v5e
topology: v5e:2x2
jax: 0.10.0
libtpu: 0.0.40
codegen_flags: <defaults>
</compile_context>

<pallas_src>
import functools

import numpy as np
import jax
import jax.numpy as jnp
from jax import lax
from jax.experimental import pallas as pl
from jax.experimental.pallas import tpu as pltpu

ALPHA = 0.25
GAMMA = 2.0

LANES = 128
MAX_TILE_PIXELS = 64 * 1024          # pixels per grid step (amortize ~0.35us/step overhead)
VMEM_BUDGET = 16 * 1024 * 1024       # double-buffered working-set budget for tile sizing
VMEM_LIMIT = 32 * 1024 * 1024        # scoped VMEM limit for Mosaic; safe on v5e/v6e/v7x


def _focal_kernel(logits_ref, tgt_ref, out_ref, *, alpha, gamma, hw, nt, masked_tail):
    """One (image, chunk, pixel-tile) grid step.

    logits_ref: (C, A, B)  float  — logits for this image / pixel tile
    tgt_ref:    (A, B)     int    — class targets (native narrow dtype, widened here)
    out_ref:    (A, B)     f32    — per-(image, chunk) partial sums, resident across t
    Aligned path: (A, B) = (S_tile, 128).  Fallback path: (A, B) = (1, TILE).
    """
    chunk = pl.program_id(1)
    t = pl.program_id(2)

    @pl.when(t == 0)
    def _():
        out_ref[...] = jnp.zeros_like(out_ref)

    logits = logits_ref[...].astype(jnp.float32)                  # (C, A, B)
    tgt = tgt_ref[...].astype(jnp.int32)                          # (A, B)

    # Numerically stable cross-entropy: ce = logsumexp_c(logits) - logits[target].
    # The class axis is the leading (major) axis, so these reductions are plain
    # elementwise VPU ops over C dense (A, B) slabs — no cross-lane traffic.
    m = jnp.max(logits, axis=0)                                   # (A, B)
    lse = jnp.log(jnp.sum(jnp.exp(logits - m[None]), axis=0)) + m
    cls_ids = lax.broadcasted_iota(jnp.int32, logits.shape, 0)
    tgt_logit = jnp.sum(jnp.where(cls_ids == tgt[None], logits, 0.0), axis=0)
    ce = jnp.maximum(lse - tgt_logit, 0.0)                        # clamp ULP negatives

    # Focal modulation: alpha * (1 - pt)**gamma * ce
    pt = jnp.exp(-ce)
    base = jnp.maximum(1.0 - pt, 0.0)
    g = float(gamma)
    if g == 2.0:
        mod = base * base                      # no pow -> no extra log/exp on the EUP
    elif g == int(g) and g >= 0:
        mod = jnp.ones_like(base)
        for _ in range(int(g)):
            mod = mod * base
    else:
        mod = jnp.power(base, jnp.float32(g))  # general (non-integer) gamma fallback
    focal = jnp.float32(alpha) * mod * ce                         # (A, B)

    if masked_tail:
        # Only the globally-last tile extends past HW; mask only there (pl.when), so
        # the iota/compare/select never hit the VPU on the common in-bounds tiles.
        a, b = focal.shape
        gt = chunk * pl.num_programs(2) + t

        @pl.when(gt == nt - 1)
        def _():
            row = lax.broadcasted_iota(jnp.int32, (a, b), 0)
            lane = lax.broadcasted_iota(jnp.int32, (a, b), 1)
            pix = gt * (a * b) + row * b + lane
            out_ref[...] += jnp.where(pix < hw, focal, 0.0)

        @pl.when(gt != nt - 1)
        def _():
            out_ref[...] += focal
    else:
        out_ref[...] += focal


def _pick_rows(s, c, in_isz, tgt_isz):
    """Sublane-rows (of 128 pixels) per tile for the aligned path."""
    per_row = LANES * 2 * (c * in_isz + tgt_isz + 4)   # 2x: double-buffered in + out
    cap = VMEM_BUDGET // per_row
    cap = min(cap, MAX_TILE_PIXELS // LANES)
    cap = max(8, (cap // 8) * 8)
    return s if s <= cap else int(cap)


def _pick_lanes(hw, c, in_isz, tgt_isz):
    """Lane-tile size for the HW % 128 != 0 fallback path."""
    per_lane = 2 * (c * in_isz + tgt_isz + 4)
    cap = VMEM_BUDGET // per_lane
    cap = min(cap, MAX_TILE_PIXELS)
    cap = max(LANES, (cap // LANES) * LANES)
    return hw if hw <= cap else int(cap)


def focal_loss(inputs, targets, alpha=ALPHA, gamma=GAMMA, reduction="mean"):
    """inputs: (N, C, H, W) float, targets: (N, H, W) int — matches PyTorch FocalLoss."""
    N, C, H, W = inputs.shape
    HW = H * W
    P = N * HW

    # Keep narrow integer target dtypes (uint8/int16/...) — widen in-register inside the
    # kernel instead of a whole-tensor HBM round trip in the wrapper.
    if targets.dtype.kind in ("i", "u") and targets.dtype.itemsize <= 4:
        tgt = targets
    else:
        tgt = targets.astype(jnp.int32)

    in_isz = inputs.dtype.itemsize
    tgt_isz = tgt.dtype.itemsize

    aligned = (HW % LANES == 0)
    if aligned:
        # Vreg-dense path: pixels -> (S, 128) sublane/lane blocks (free, contiguous view).
        S = HW // LANES
        rows = _pick_rows(S, C, in_isz, tgt_isz)
        logits_in = inputs.reshape(N, C, S, LANES)
        tgt_in = tgt.reshape(N, S, LANES)
        A, B = rows, LANES
        nt = pl.cdiv(S, rows)
        masked_tail = (S % rows) != 0
    else:
        # Fallback: lane-only tiling of the flat pixel axis.
        tile = _pick_lanes(HW, C, in_isz, tgt_isz)
        logits_in = inputs.reshape(N, C, 1, HW)
        tgt_in = tgt.reshape(N, 1, HW)
        A, B = 1, tile
        nt = pl.cdiv(HW, tile)
        masked_tail = (HW % tile) != 0

    # Second "parallel" axis over pixel chunks for v7x megacore load balance (free on
    # single-TC v5e/v6e). Only split when the tile count divides evenly (no extra masking).
    n_chunks = 2 if (nt >= 2 and nt % 2 == 0) else 1
    nt_pc = nt // n_chunks

    if aligned:
        lg_map = lambda n, c, t: (n, 0, c * nt_pc + t, 0)
        tg_map = lambda n, c, t: (n, c * nt_pc + t, 0)
    else:
        lg_map = lambda n, c, t: (n, 0, 0, c * nt_pc + t)
        tg_map = lambda n, c, t: (n, 0, c * nt_pc + t)

    kernel = functools.partial(_focal_kernel, alpha=float(alpha), gamma=float(gamma),
                               hw=HW, nt=nt, masked_tail=masked_tail)

    partial_sums = pl.pallas_call(
        kernel,
        out_shape=jax.ShapeDtypeStruct((N, n_chunks, A, B), jnp.float32),
        grid_spec=pltpu.PrefetchScalarGridSpec(
            num_scalar_prefetch=0,
            grid=(N, n_chunks, nt_pc),
            in_specs=[
                pl.BlockSpec((None, C, A, B), lg_map),
                pl.BlockSpec((None, A, B), tg_map),
            ],
            out_specs=pl.BlockSpec((None, None, A, B), lambda n, c, t: (n, c, 0, 0)),
        ),
        compiler_params=pltpu.CompilerParams(
            dimension_semantics=("parallel", "parallel", "arbitrary"),
            vmem_limit_bytes=VMEM_LIMIT),
    )(logits_in, tgt_in)

    # Single tiny cross-lane reduce + mean outside the kernel.
    total = jnp.sum(partial_sums)
    if reduction == "mean":
        return total / jnp.float32(P)
    if reduction == "sum":
        return total
    # TODO(synk): reduction='none' (per-pixel focal map) needs a non-reducing variant.
    raise NotImplementedError("reduction must be 'mean' or 'sum'")


def _focal_loss_ref(inputs, targets, alpha=ALPHA, gamma=GAMMA):
    # pure-JAX reference (matches F.cross_entropy(reduction='none') + focal + mean)
    logits = inputs.astype(jnp.float32)
    logp = jax.nn.log_softmax(logits, axis=1)                      # (N, C, H, W)
    tgt_logp = jnp.take_along_axis(logp, targets[:, None].astype(jnp.int32),
                                   axis=1)[:, 0]                   # (N, H, W)
    ce = -tgt_logp
    pt = jnp.exp(-ce)
    focal = alpha * (1.0 - pt) ** gamma * ce
    return jnp.mean(focal)


if __name__ == "__main__":
    key = jax.random.PRNGKey(0)
    k1, k2 = jax.random.split(key)

    N, C, H, W = 2, 4, 16, 16
    x = jax.random.normal(k1, (N, C, H, W), dtype=jnp.float32)
    t = jax.random.randint(k2, (N, H, W), 0, C, dtype=jnp.int32)

    loss = focal_loss(x, t)
    loss = jax.block_until_ready(loss)

    ref = _focal_loss_ref(x, t)
    np.testing.assert_allclose(np.asarray(loss), np.asarray(ref), rtol=1e-5, atol=1e-6)

    print("KERNEL_OK")
</pallas_src>

<mosaic_0001>
module attributes {stable_mosaic.version = 11 : i64} {
  func.func @_focal_kernel(%arg0: i32, %arg1: i32, %arg2: i32, %arg3: memref<1x4x2x128xf32, #tpu.memory_space<vmem>>, %arg4: memref<1x2x128xi32, #tpu.memory_space<vmem>>, %arg5: memref<1x1x2x128xf32, #tpu.memory_space<vmem>>) attributes {dimension_semantics = [#tpu.dimension_semantics<parallel>, #tpu.dimension_semantics<parallel>, #tpu.dimension_semantics<arbitrary>], iteration_bounds = array<i64: 2, 1, 1>, scalar_prefetch = 0 : i64, scratch_operands = 0 : i64, tpu.core_type = #tpu.core_type<tc>, window_params = [{transform_indices = @transform_0, window_bounds = array<i64: 1, 4, 2, 128>}, {transform_indices = @transform_1, window_bounds = array<i64: 1, 2, 128>}, {transform_indices = @transform_2, window_bounds = array<i64: 1, 1, 2, 128>}]} {
    %c0_i32 = arith.constant 0 : i32
    %0 = arith.cmpi eq, %arg2, %c0_i32 : i32
    %1 = arith.extui %0 : i1 to i32
    %c0_i32_0 = arith.constant 0 : i32
    %2 = arith.cmpi ne, %1, %c0_i32_0 : i32
    scf.if %2 {
      %cst_23 = arith.constant 0.000000e+00 : f32
      %42 = vector.broadcast %cst_23 : f32 to vector<2x128xf32>
      %c0_24 = arith.constant 0 : index
      %c0_25 = arith.constant 0 : index
      %c0_26 = arith.constant 0 : index
      %c0_27 = arith.constant 0 : index
      %43 = vector.load %arg5[%c0_24, %c0_25, %c0_26, %c0_27] : memref<1x1x2x128xf32, #tpu.memory_space<vmem>>, vector<1x1x2x128xf32>
      %44 = vector.shape_cast %43 : vector<1x1x2x128xf32> to vector<2x128xf32>
      %45 = vector.shape_cast %42 : vector<2x128xf32> to vector<1x1x2x128xf32>
      tpu.vector_store %arg5[%c0_24, %c0_25, %c0_26, %c0_27], %45 {strides = array<i32>} : memref<1x1x2x128xf32, #tpu.memory_space<vmem>>, vector<1x1x2x128xf32>,
    } else {
    }
    %c0 = arith.constant 0 : index
    %c0_1 = arith.constant 0 : index
    %c0_2 = arith.constant 0 : index
    %c0_3 = arith.constant 0 : index
    %3 = vector.load %arg3[%c0, %c0_1, %c0_2, %c0_3] : memref<1x4x2x128xf32, #tpu.memory_space<vmem>>, vector<1x4x2x128xf32>
    %4 = vector.shape_cast %3 : vector<1x4x2x128xf32> to vector<4x2x128xf32>
    %c0_4 = arith.constant 0 : index
    %c0_5 = arith.constant 0 : index
    %c0_6 = arith.constant 0 : index
    %5 = vector.load %arg4[%c0_4, %c0_5, %c0_6] : memref<1x2x128xi32, #tpu.memory_space<vmem>>, vector<1x2x128xi32>
    %6 = vector.shape_cast %5 : vector<1x2x128xi32> to vector<2x128xi32>
    %cst = arith.constant dense<0xFF800000> : vector<2x128xf32>
    %7 = vector.multi_reduction <maximumf>, %4, %cst [0] : vector<4x2x128xf32> to vector<2x128xf32>
    %8 = vector.shape_cast %7 : vector<2x128xf32> to vector<1x2x128xf32>
    %9 = vector.broadcast %8 : vector<1x2x128xf32> to vector<4x2x128xf32>
    %10 = arith.subf %4, %9 : vector<4x2x128xf32>
    %11 = math.exp %10 : vector<4x2x128xf32>
    %cst_7 = arith.constant dense<0.000000e+00> : vector<2x128xf32>
    %12 = vector.multi_reduction <add>, %11, %cst_7 [0] : vector<4x2x128xf32> to vector<2x128xf32>
    %13 = math.log %12 : vector<2x128xf32>
    %14 = arith.addf %13, %7 : vector<2x128xf32>
    %15 = tpu.iota {dimensions = array<i32: 0>} : vector<4x2x128xi32>
    %16 = vector.shape_cast %6 : vector<2x128xi32> to vector<1x2x128xi32>
    %17 = vector.broadcast %16 : vector<1x2x128xi32> to vector<4x2x128xi32>
    %18 = arith.cmpi eq, %15, %17 : vector<4x2x128xi32>
    %cst_8 = arith.constant 0.000000e+00 : f32
    %19 = vector.broadcast %cst_8 : f32 to vector<4x2x128xf32>
    %20 = arith.select %18, %4, %19 : vector<4x2x128xi1>, vector<4x2x128xf32>
    %cst_9 = arith.constant dense<0.000000e+00> : vector<2x128xf32>
    %21 = vector.multi_reduction <add>, %20, %cst_9 [0] : vector<4x2x128xf32> to vector<2x128xf32>
    %22 = arith.subf %14, %21 : vector<2x128xf32>
    %cst_10 = arith.constant 0.000000e+00 : f32
    %23 = vector.broadcast %cst_10 : f32 to vector<2x128xf32>
    %24 = arith.maximumf %22, %23 : vector<2x128xf32>
    %cst_11 = arith.constant 0.000000e+00 : f32
    %25 = vector.broadcast %cst_11 : f32 to vector<2x128xf32>
    %26 = arith.subf %25, %24 : vector<2x128xf32>
    %27 = math.exp %26 : vector<2x128xf32>
    %cst_12 = arith.constant 1.000000e+00 : f32
    %28 = vector.broadcast %cst_12 : f32 to vector<2x128xf32>
    %29 = arith.subf %28, %27 : vector<2x128xf32>
    %cst_13 = arith.constant 0.000000e+00 : f32
    %30 = vector.broadcast %cst_13 : f32 to vector<2x128xf32>
    %31 = arith.maximumf %29, %30 : vector<2x128xf32>
    %32 = arith.mulf %31, %31 : vector<2x128xf32>
    %cst_14 = arith.constant 2.500000e-01 : f32
    %33 = vector.broadcast %cst_14 : f32 to vector<2x128xf32>
    %34 = arith.mulf %33, %32 : vector<2x128xf32>
    %35 = arith.mulf %34, %24 : vector<2x128xf32>
    %c0_15 = arith.constant 0 : index
    %c0_16 = arith.constant 0 : index
    %c0_17 = arith.constant 0 : index
    %c0_18 = arith.constant 0 : index
    %36 = vector.load %arg5[%c0_15, %c0_16, %c0_17, %c0_18] : memref<1x1x2x128xf32, #tpu.memory_space<vmem>>, vector<1x1x2x128xf32>
    %37 = vector.shape_cast %36 : vector<1x1x2x128xf32> to vector<2x128xf32>
    %38 = arith.addf %37, %35 : vector<2x128xf32>
    %c0_19 = arith.constant 0 : index
    %c0_20 = arith.constant 0 : index
    %c0_21 = arith.constant 0 : index
    %c0_22 = arith.constant 0 : index
    %39 = vector.load %arg5[%c0_19, %c0_20, %c0_21, %c0_22] : memref<1x1x2x128xf32, #tpu.memory_space<vmem>>, vector<1x1x2x128xf32>
    %40 = vector.shape_cast %39 : vector<1x1x2x128xf32> to vector<2x128xf32>
    %41 = vector.shape_cast %38 : vector<2x128xf32> to vector<1x1x2x128xf32>
    tpu.vector_store %arg5[%c0_19, %c0_20, %c0_21, %c0_22], %41 {strides = array<i32>} : memref<1x1x2x128xf32, #tpu.memory_space<vmem>>, vector<1x1x2x128xf32>,
    return
  }
  func.func @transform_0(%arg0: i32, %arg1: i32, %arg2: i32) -> (i32, i32, i32, i32) {
    %c1_i32 = arith.constant 1 : i32
    %0 = arith.muli %arg1, %c1_i32 : i32
    %1 = arith.addi %0, %arg2 : i32
    %c0_i32 = arith.constant 0 : i32
    %c0_i32_0 = arith.constant 0 : i32
    %c0_i32_1 = arith.constant 0 : i32
    return %arg0, %c0_i32, %1, %c0_i32_0 : i32, i32, i32, i32
  }
  func.func @transform_1(%arg0: i32, %arg1: i32, %arg2: i32) -> (i32, i32, i32) {
    %c1_i32 = arith.constant 1 : i32
    %0 = arith.muli %arg1, %c1_i32 : i32
    %1 = arith.addi %0, %arg2 : i32
    %c0_i32 = arith.constant 0 : i32
    %c0_i32_0 = arith.constant 0 : i32
    return %arg0, %1, %c0_i32 : i32, i32, i32
  }
  func.func @transform_2(%arg0: i32, %arg1: i32, %arg2: i32) -> (i32, i32, i32, i32) {
    %c0_i32 = arith.constant 0 : i32
    %c0_i32_0 = arith.constant 0 : i32
    %c0_i32_1 = arith.constant 0 : i32
    return %arg0, %arg1, %c0_i32, %c0_i32_0 : i32, i32, i32, i32
  }
}

</mosaic_0001>

<bundles_post_ra>
// kernel: tpu_custom_call.1
= control target key start
LH: loop header
LB: loop body
LE: loop exit
PB: predicated region body
PF: predicated region fallthrough
CT: control target
= control target key end

     0   :  { %7 = vsyncpa [#allocation3], 0  ;;  %s855_s0 = inlined_call_operand.hbm [shape: f32[2,4,2,128], index: 0, kind: input, shape index: {}]   ;;  %s856_s1 = inlined_call_operand.hbm [shape: s32[2,2,128], index: 1, kind: input, shape index: {}]   ;;  %s857_s2 = inlined_call_operand.hbm [shape: f32[2,1,2,128], index: 2, kind: output, shape index: {}]  }
   0x1   :  { %9 = vsyncpa [#allocation3 + $0x1], 0 }
   0x2   :  { %10 = vsyncpa [#allocation6], 0 }
   0x3   :  { %12 = vsyncpa [#allocation6 + $0x1], 0 }
   0x4   :  { %13 = vsyncpa [#allocation4], 0 }
   0x5   :  { %15 = vsyncpa [#allocation4 + $0x1], 0  ;;  %s699_s9 = smov 0   ;;  %s701_s10 = smov 0  }
   0x6   :  { %s703_s11 = smov 0   ;;  %s705_s12 = smov 0  }
   0x7   :  { %s707_s13 = smov 0   ;;  %s709_s14 = smov 0  }
   0x8 LB: > { %s433_s15 = sadd.s32 4294967295, %s679_s14   ;;  %s434_s16 = sadd.s32 4294967294, %s679_s14   ;;  %s679_s14 = sphi %s709_s14, %s21_s14   ;;  %s675_s13 = sphi %s707_s13, %s867_s13   ;;  %s671_s12 = sphi %s705_s12, %s866_s12   ;;  %s667_s11 = sphi %s703_s11, %s865_s11   ;;  %s663_s10 = sphi %s701_s10, %s864_s10   ;;  %s659_s9 = sphi %s699_s9, %s863_s9  }
   0x9   : > { %s40_s17 = sadd.s32 1, %s675_s13  ;;  %s51_s18 = sadd.s32 1, %s667_s11 }
   0xa   : > { %p42_p0 = scmp.ge.s32.totalorder %s40_s17, 2  ;;  %p58_p1 = scmp.ne.s32.totalorder %s667_s11, %s663_s10 }
   0xb   : > { %p59_p2 = scmp.eq.s32.totalorder %s679_s14, 0  ;;  %p64_p3 = scmp.ne.s32.totalorder %s663_s10, %s659_s9 }
   0xc   : > { %s869_s17 = smov (%p42_p0, %s40_s17), 0  ;;  %p65_p5 = scmp.eq.s32.totalorder %s433_s15, 0 }
   0xd   : > { %p740_p4 = por %p59_p2, %p58_p1  ;;  %s46_s20 = ssub.s32 %s675_s13, %s869_s17 }
   0xe   : > { %p120_p6 = scmp.eq.s32.totalorder %s433_s15, 1  ;;  %p49_p7 = scmp.eq.s32.totalorder %s46_s20, 0 }
   0xf   : > { %p746_p8 = por %p65_p5, %p64_p3  ;;  %p126_p10 = scmp.eq.s32.totalorder %s434_s16, 1 }
  0x10   : > { %p750_p9 = por %p120_p6, %p58_p1  ;;  %p436_p12 = scmp.ge.s32.totalorder %s679_s14, 2 }
  0x11   : > { %s755_s23 = scalar_select %p49_p7, %s667_s11, %s51_s18  }
  0x12   : > { %p757_p11 = por %p126_p10, %p64_p3  ;;  %p468_p13 = scmp.lt.s32.totalorder %s679_s14, 2 }
  0x13   : > { %s146_s25 = sand.u32 1, %s667_s11   ;;  %s450_s27 = sshll.u32 %s675_s13, 3 }
  0x14   : > { %s437_s26 = sshll.u32 %s146_s25, 3  ;;  %s157_s30 = scalar_lea.hbm %s855_s0, %s450_s27 }
  0x15   : > { %s150_s3 = scalar_lea.vmem [#allocation2], %s437_s26  ;;  %s158_s5 = sshll.u32 %s157_s30, 4  ;;  %s159_s5 = int_to_ptr.hbm [resolvable:$true] %s158_s5 }
  0x16   : > { %s160_s4 = sshll.u32 %s150_s3, 4  ;;  %p770_p0 = pnand %p468_p13, %p740_p4  ;;  %s161_s4 = int_to_ptr.vmem [resolvable:$true] %s160_s4 }
  0x17   : > { %p442_p1 = scmp.ge.s32.totalorder %s679_s14, 1  ;;  %s147_s7 = scalar_lea.sflag [#allocation3], %s146_s25 }
  0x18   : > { %s681_s8 = smov 32   ;;  %s682_s15 = smov 2  }
  0x19   : > { %460 = dma.hbm_to_vmem [thread:$0]  (!%p770_p0), %s159_s5, 128, %s161_s4, %s147_s7, %s681_s8, %s681_s8, %s682_s15  }
  0x1a   : > { %p189_p2 = scmp.lt.s32.totalorder %s679_s14, 3  ;;  %s440_s16 = sshll.u32 %s146_s25, 1 }
  0x1b   : > { %s441_s18 = sshll.u32 %s675_s13, 1  ;;  %s174_s27 = scalar_lea.vmem [#allocation5], %s440_s16 }
  0x1c   : > { %p190_p3 = pnand %p442_p1, %p189_p2  ;;  %s180_s19 = scalar_lea.hbm %s856_s1, %s441_s18 }
  0x1d   : > { %s184_s28 = sshll.u32 %s174_s27, 4  ;;  %s182_s29 = sshll.u32 %s180_s19, 4  ;;  %s185_s28 = int_to_ptr.vmem [resolvable:$true] %s184_s28  ;;  %s183_s29 = int_to_ptr.hbm [resolvable:$true] %s182_s29 }
  0x1e   : > { %s171_s30 = scalar_lea.sflag [#allocation6], %s146_s25  ;;  %193 = sbr.rel (%p190_p3) target bundleno = 107 (0x6b), region = 28 }
  0x1f   : > { %463 = dma.hbm_to_vmem [thread:$0]  (!%p770_p0), %s183_s29, 32, %s185_s28, %s171_s30  }
  0x20   : > { %s785_s3 = sand.u32 (!%p190_p3), 1, %s663_s10  }
  0x21   : > { %s443_s4 = sshll.u32 (!%p190_p3), %s785_s3, 3  ;;  %s196_s5 = scalar_lea.sflag (!%p190_p3), [#allocation3], %s785_s3 }
  0x22   : > { %s199_s7 = scalar_lea.vmem (!%p190_p3), [#allocation2], %s443_s4 }
  0x23   : > { %646 = dma.done.wait (%p746_p8), %s196_s5, 128  }
  0x24   : > { %648 = vsyncadd (%p746_p8), %s196_s5, 4294967168  ;;  %s444_s25 = sshll.u32 %s785_s3, 1  ;;  %s206_s6 = scalar_lea.sflag [#allocation6], %s785_s3 }
  0x25   : > { %s209_s8 = scalar_lea.vmem [#allocation5], %s444_s25 }
  0x26   : > { %650 = dma.done.wait (%p746_p8), %s206_s6, 32  }
  0x27   : > { %652 = vsyncadd (%p746_p8), %s206_s6, 4294967264  ;;  %s799_s15 = scalar_lea.vmem [#allocation7], %s444_s25  ;;  %v683_v0 = vmov 0.0   ;;  %vm248_vm0 = vcmask 1041408   ;;  %v243_v1 = vld [vmem:[%s199_s7] sm:$0x3] }
  0x28   : > { %242 = vst [vmem:[%s799_s15] sm:$0x3] %v683_v0  ;;  %v244_v2 = vld [vmem:[%s199_s7 + $0x2] sm:$0x3]  ;;  %v245_v3 = vld [vmem:[%s199_s7 + $0x4] sm:$0x3]  ;;  %v249_v5 = vsel %vm248_vm0, %v243_v1, -inf }
  0x29   : > { %v246_v4 = vld [vmem:[%s199_s7 + $0x6] sm:$0x3]  ;;  %v250_v6 = vsel %vm248_vm0, %v244_v2, -inf  ;;  %v251_v7 = vsel %vm248_vm0, %v245_v3, -inf  ;;  %v247_v20 = vld [vmem:[%s209_s8] sm:$0x3] }
  0x2a   : > { %v252_v8 = vsel %vm248_vm0, %v246_v4, -inf  ;;  %v253_v9 = vmax.f32 %v249_v5, %v250_v6  ;;  %vm278_vm1 = vcmp.eq.s32.totalorder %v247_v20, 0  ;;  %vm279_vm2 = vcmp.eq.s32.totalorder %v247_v20, 1  ;;  %s447_s21 = sshll.u32 %s671_s12, 1  ;;  %s320_s26 = sshll.u32 %s799_s15, 4  ;;  %s321_s26 = int_to_ptr.vmem [resolvable:$true] %s320_s26 }
  0x2b   : > { %v254_v10 = vmax.f32 %v251_v7, %v252_v8  ;;  %v282_v26 = vsel %vm278_vm1, %v243_v1, 0.0  ;;  %v283_v27 = vsel %vm279_vm2, %v244_v2, 0.0  ;;  %vm280_vm3 = vcmp.eq.s32.totalorder %v247_v20, 2  ;;  %s318_s20 = scalar_lea.hbm %s857_s2, %s447_s21  ;;  %s307_s27 = scalar_lea.sflag [#allocation4], %s785_s3 }
  0x2c   : > { %v286_v33 = vsel %vm248_vm0, %v282_v26, 0.0  ;;  %v287_v34 = vsel %vm248_vm0, %v283_v27, 0.0  ;;  %v284_v35 = vsel %vm280_vm3, %v245_v3, 0.0  ;;  %vm281_vm4 = vcmp.eq.s32.totalorder %v247_v20, 3  ;;  %s322_s19 = sshll.u32 %s318_s20, 4  ;;  %s613_s4 = scalar_lea.hbm %s857_s2, 4  ;;  %s323_s19 = int_to_ptr.hbm [resolvable:$true] %s322_s19 }
  0x2d   : > { %v255_v11 = vmax.f32 %v253_v9, %v254_v10  ;;  %v288_v37 = vadd.f32 %v287_v34, %v286_v33  ;;  %v289_v38 = vsel %vm248_vm0, %v284_v35, 0.0  ;;  %v285_v39 = vsel %vm281_vm4, %v246_v4, 0.0  ;;  %s607_s28 = sshra.s32 %s323_s19, 4  ;;  %s608_s28 = int_to_ptr.hbm [resolvable:$true] %s607_s28 }
  0x2e   : > { %v291_v41 = vsel %vm248_vm0, %v285_v39, 0.0  ;;  %s609_s12 = scalar_lea.hbm %s608_s28, 2  ;;  %p614_p7 = scmp.lt.s32.totalorder %s608_s28, %s857_s2 }
  0x2f   : > { %v256_v12 = vsub.f32 %v243_v1, %v255_v11  ;;  %v257_v13 = vsub.f32 %v244_v2, %v255_v11  ;;  %v258_v14 = vsub.f32 %v245_v3, %v255_v11  ;;  %v259_v15 = vsub.f32 %v246_v4, %v255_v11  ;;  %v303_v55 = vld [vmem:[%s799_s15] sm:$0x3]  ;;  %p610_p4 = scmp.ne.s32.totalorder %s608_s28, %s609_s12  ;;  %p615_p8 = scmp.lt.s32.totalorder %s613_s4, %s609_s12 }
  0x30   : > { %v290_v40 = vadd.f32 %v289_v38, %v288_v37 }
  0x31   : > { %v260_v16 = vmul.f32 1.442695, %v256_v12  ;;  %v262_v17 = vmul.f32 1.442695, %v257_v13  ;;  %v264_v18 = vmul.f32 1.442695, %v258_v14  ;;  %p611_p5 = pnand %p610_p4, %p750_p9  ;;  %p616_p10 = por %p615_p8, %p614_p7 }
  0x32   : > { %v266_v19 = vmul.f32 1.442695, %v259_v15  ;;  %v292_v44 = vadd.f32 %v291_v41, %v290_v40 }
  0x33   : > { %521 = vpow2.f32 %v260_v16  ;;  %p612_p6 = pneg %p611_p5 }
  0x34   : > { %523 = vpow2.f32 %v262_v17 }
  0x35   : > { %525 = vpow2.f32 %v264_v18  ;;  %p617_p13 = pnand %p616_p10, %p612_p6 }
  0x36   : > { %527 = vpow2.f32 %v266_v19 }
  0x39   : > { %v522_v21 = vpop.eup %521 }
  0x3a   : > { %v524_v22 = vpop.eup %523  ;;  %v268_v23 = vsel %vm248_vm0, %v522_v21, 0.0 }
  0x3b   : > { %v526_v24 = vpop.eup %525  ;;  %v269_v25 = vsel %vm248_vm0, %v524_v22, 0.0 }
  0x3c   : > { %v528_v28 = vpop.eup %527  ;;  %v270_v29 = vadd.f32 %v269_v25, %v268_v23  ;;  %v271_v30 = vsel %vm248_vm0, %v526_v24, 0.0 }
  0x3d   : > { %v273_v31 = vsel %vm248_vm0, %v528_v28, 0.0 }
  0x3e   : > { %v272_v32 = vadd.f32 %v271_v30, %v270_v29 }
  0x40   : > { %v274_v36 = vadd.f32 %v273_v31, %v272_v32 }
  0x42   : > { %529 = vlog2.f32 %v274_v36 }
  0x48   : > { %v530_v42 = vpop.eup %529 }
  0x49   : > { %v276_v43 = vmul.f32 0.6931472, %v530_v42 }
  0x4b   : > { %v277_v45 = vadd.f32 %v276_v43, %v255_v11 }
  0x4d   : > { %v293_v46 = vsub.f32 %v277_v45, %v292_v44 }
  0x4f   : > { %v294_v47 = vmax.f32 %v293_v46, 0.0 }
  0x51   : > { %v295_v48 = vsub.f32 0.0, %v294_v47 }
  0x53   : > { %v296_v49 = vmul.f32 1.442695, %v295_v48 }
  0x55   : > { %531 = vpow2.f32 %v296_v49 }
  0x5b   : > { %v532_v50 = vpop.eup %531 }
  0x5c   : > { %v298_v51 = vsub.f32 1.0, %v532_v50 }
  0x5e   : > { %v299_v52 = vmax.f32 %v298_v51, 0.0 }
  0x60   : > { %v300_v53 = vmul.f32 %v299_v52, %v299_v52 }
  0x62   : > { %v301_v54 = vmul.f32 0.25, %v300_v53 }
  0x64   : > { %v302_v56 = vmul.f32 %v301_v54, %v294_v47 }
  0x66   : > { %v304_v57 = vadd.f32 %v303_v55, %v302_v56 }
  0x68   : > { %305 = vst [vmem:[%s799_s15] sm:$0x3] %v304_v57 }
  0x69   : > { %620 = shalt.err (!%p617_p13)
}
  0x6a   : > { %455 = dma.vmem_to_hbm [thread:$0]  (%p750_p9), %s321_s26, 32, %s323_s19, %s307_s27  }
  0x6b PF: > { %s334_s3 = sand.u32 1, %s659_s9   ;;  %p465_p0 = pnand %p436_p12, %p757_p11 }
  0x6c   : > { %s335_s25 = scalar_lea.sflag [#allocation4], %s334_s3 }
  0x6d   : > { %p466_p1 = pneg %p465_p0 }
  0x6f   : > { %654 = dma.done.wait (%p466_p1), %s335_s25, 32  }
  0x70   : > { %656 = vsyncadd (%p466_p1), %s335_s25, 4294967264  ;;  %s21_s14 = sadd.s32 1, %s679_s14   ;;  %s863_s9 = smov %s663_s10 }
  0x71   : > { %p18_p2 = scmp.ge.s32.totalorder %s21_s14, 4   ;;  %s864_s10 = smov %s667_s11 }
  0x72   : > { %s865_s11 = smov %s755_s23  ;;  %s866_s12 = smov %s675_s13 }
  0x73   : > { %s867_s13 = smov %s869_s17  ;;  %20 = sbr.rel (!%p18_p2) target bundleno = 8 (0x8), region = 90 }
  0x78   :  { %341 = vsyncpa [#allocation3], 1 }
  0x79   :  { %343 = vsyncpa [#allocation3 + $0x1], 1 }
  0x7a   :  { %344 = vsyncpa [#allocation6], 1 }
  0x7b   :  { %346 = vsyncpa [#allocation6 + $0x1], 1 }
  0x7c   :  { %347 = vsyncpa [#allocation4], 1 }
  0x7d   :  { %349 = vsyncpa [#allocation4 + $0x1], 1 }

</bundles_post_ra>
